<compile_context>
chip_gen: v6e
topology: v6e:2x2x1
jax: 0.10.0
libtpu: 0.0.40
codegen_flags: <defaults>
</compile_context>

<pallas_src>
import functools

import jax
import jax.numpy as jnp
from jax.experimental import pallas as pl
from jax.experimental.pallas import tpu as pltpu


# ---------------------------------------------------------------------------
# Kernels
# ---------------------------------------------------------------------------

def _rprelu_rowparam_kernel(x_ref, p_ref, o_ref, *, compute_dtype):
    # x_ref / o_ref: (row_tile, lane_tile); rows enumerate (n, c), lanes are H*W.
    # p_ref: (row_tile, 3) packed per-row params [inp_bias, alpha, out_bias].
    x = x_ref[...].astype(compute_dtype)
    b_in = p_ref[:, 0:1].astype(compute_dtype)
    alpha = p_ref[:, 1:2].astype(compute_dtype)
    b_out = p_ref[:, 2:3].astype(compute_dtype)
    xb = x + b_in
    y = jnp.where(xb > 0, xb, alpha * xb)
    o_ref[...] = (y + b_out).astype(o_ref.dtype)


def _rprelu_laneparam_kernel(x_ref, p_ref, o_ref, *, compute_dtype):
    # x_ref / o_ref: (row_tile, lane_tile); rows enumerate n, lanes are C*H*W.
    # p_ref: (3, lane_tile) packed per-lane params [inp_bias; alpha; out_bias].
    x = x_ref[...].astype(compute_dtype)
    b_in = p_ref[0:1, :].astype(compute_dtype)
    alpha = p_ref[1:2, :].astype(compute_dtype)
    b_out = p_ref[2:3, :].astype(compute_dtype)
    xb = x + b_in
    y = jnp.where(xb > 0, xb, alpha * xb)
    o_ref[...] = (y + b_out).astype(o_ref.dtype)


# ---------------------------------------------------------------------------
# Planning helpers (all trace-time Python)
# ---------------------------------------------------------------------------

def _device_plan():
    """Generation-aware block/VMEM plan (safe defaults if the query fails)."""
    kind = ""
    try:
        kind = jax.devices()[0].device_kind.lower()
    except Exception:
        pass
    is_v7 = "v7" in kind
    if is_v7:
        # Higher HBM BW -> bigger blocks to amortize per-step overhead; keep
        # 2x-in + 2x-out + params well under the 64 MiB physical VMEM.
        target_bytes = 6 << 20
        vmem_limit = 48 * 1024 * 1024
        num_cores = 2
    else:
        target_bytes = 4 << 20
        vmem_limit = 32 * 1024 * 1024   # v5e scoped default is only 16 MiB
        num_cores = 1
    # v5e (and unknown chips) have no bf16 VPU -> upcast sub-32-bit to f32 there.
    f32_for_subword = not (("v6" in kind) or is_v7)
    return target_bytes, vmem_limit, num_cores, f32_for_subword


def _sublane_multiple(dtype):
    """Dtype-native sublane packing: 8 for 4-byte, 16 for 2-byte, 32 for 1-byte."""
    return max(8, 32 // jnp.dtype(dtype).itemsize)


def _block_plan(R, L, itemsize, sub_mult, target_bytes, num_cores,
                max_lane_tile=16384):
    """Pick (row_tile, lane_tile): (8,128)-legal, ~target_bytes, grid>=2 on multi-TC."""
    # Lane (last) axis: full extent if reasonable (full-dim blocks need no 128
    # divisibility), otherwise a multiple of 128; tails are masked by Pallas.
    lane_tile = L if L <= max_lane_tile else max_lane_tile
    # Sublane axis: dtype-native multiple, sized so the block hits target_bytes.
    rows_target = max(1, target_bytes // max(1, lane_tile * itemsize))
    if R <= sub_mult:
        row_tile = R                       # full dim -> no divisibility requirement
    else:
        row_tile = min(R, rows_target)
        row_tile = max(sub_mult, (row_tile // sub_mult) * sub_mult)

    # Make sure multi-TC chips (v7x) get at least 2 grid steps to shard.
    def _grid_size():
        return pl.cdiv(R, row_tile) * pl.cdiv(L, lane_tile)

    if num_cores >= 2 and _grid_size() < 2:
        if R > sub_mult:
            half_r = -(-((R + 1) // 2) // sub_mult) * sub_mult
            row_tile = min(row_tile, max(sub_mult, half_r))
        if _grid_size() < 2 and L >= 256:
            half_l = -(-((L + 1) // 2) // 128) * 128
            lane_tile = min(lane_tile, half_l)
    return row_tile, lane_tile


# ---------------------------------------------------------------------------
# 2-D driver
# ---------------------------------------------------------------------------

def _rprelu_2d(x2d, packed_params, *, lane_params):
    """x2d: (R, L). packed_params: (R, 3) if not lane_params else (3, L)."""
    R, L = x2d.shape
    itemsize = x2d.dtype.itemsize
    target_bytes, vmem_limit, num_cores, f32_for_subword = _device_plan()
    sub_mult = _sublane_multiple(x2d.dtype)
    row_tile, lane_tile = _block_plan(R, L, itemsize, sub_mult,
                                      target_bytes, num_cores)
    grid = (pl.cdiv(R, row_tile), pl.cdiv(L, lane_tile))

    if x2d.dtype == jnp.float32 or f32_for_subword:
        compute_dtype = jnp.float32
    else:
        compute_dtype = x2d.dtype          # native bf16 path on v6e/v7x

    x_spec = pl.BlockSpec((row_tile, lane_tile), lambda i, j: (i, j))
    if lane_params:
        p_spec = pl.BlockSpec((3, lane_tile), lambda i, j: (0, j))
        kernel = functools.partial(_rprelu_laneparam_kernel,
                                   compute_dtype=compute_dtype)
    else:
        p_spec = pl.BlockSpec((row_tile, 3), lambda i, j: (i, 0))
        kernel = functools.partial(_rprelu_rowparam_kernel,
                                   compute_dtype=compute_dtype)

    cost = pl.CostEstimate(
        flops=3 * R * L,
        transcendentals=0,
        bytes_accessed=2 * R * L * itemsize
        + packed_params.size * packed_params.dtype.itemsize,
    )

    return pl.pallas_call(
        kernel,
        out_shape=jax.ShapeDtypeStruct((R, L), x2d.dtype),
        grid=grid,
        in_specs=[x_spec, p_spec],
        out_specs=x_spec,
        compiler_params=pltpu.CompilerParams(
            dimension_semantics=("parallel", "parallel"),
            vmem_limit_bytes=vmem_limit,
        ),
        cost_estimate=cost,
    )(x2d, packed_params)


# ---------------------------------------------------------------------------
# Public NCHW entry point (matches the PyTorch module's forward)
# ---------------------------------------------------------------------------

@functools.partial(jax.jit, static_argnames=("bias",))
def rprelu_nchw(x, inp_bias, prelu_weight, out_bias, bias=True):
    """x: (N, C, H, W) as in PyTorch. Returns same shape/dtype as x.

    Note: parameters are applied in f32 (or the kernel compute dtype) and the
    result is cast back to x.dtype; this matches the kernel intent but may
    differ slightly from PyTorch's type-promotion when param/act dtypes differ.
    """
    N, C, H, W = x.shape
    HW = H * W

    alpha = prelu_weight.astype(jnp.float32)
    if bias:
        b_in = inp_bias.astype(jnp.float32)
        b_out = out_bias.astype(jnp.float32)
    else:
        # RPReLU(bias=False) is a plain per-channel PReLU.
        b_in = jnp.zeros((C,), jnp.float32)
        b_out = jnp.zeros((C,), jnp.float32)

    # Lane-dense fallback: small or non-128-multiple H*W (7x7, 14x14, 28x28, ...)
    # -> collapse to (N, C*H*W) so the lane axis stays wide and unmasked.
    use_lane_params = (HW % 128 != 0) or (HW < 512)

    if use_lane_params:
        R, L = N, C * HW
        x2d = x.reshape(R, L)                                  # free NCHW collapse
        # Per-lane params: channel c's value repeated over its HW contiguous lanes.
        packed = jnp.stack(
            [jnp.repeat(b_in, HW), jnp.repeat(alpha, HW), jnp.repeat(b_out, HW)],
            axis=0)                                            # (3, C*HW)
        y2d = _rprelu_2d(x2d, packed, lane_params=True)
    else:
        R, L = N * C, HW
        x2d = x.reshape(R, L)                                  # free NCHW collapse
        # Per-row params: row r = n*C + c uses channel c's values; one packed DMA.
        packed = jnp.tile(jnp.stack([b_in, alpha, b_out], axis=1), (N, 1))  # (R, 3)
        y2d = _rprelu_2d(x2d, packed, lane_params=False)

    return y2d.reshape(N, C, H, W)


# ---------------------------------------------------------------------------
# Pure-JAX reference (PyTorch semantics) and self-test
# ---------------------------------------------------------------------------

def _reference(x, inp_bias, prelu_weight, out_bias, bias=True):
    C = x.shape[1]
    bshape = (1, C, 1, 1)
    if bias:
        x = x + inp_bias.reshape(bshape)
    a = prelu_weight.reshape(bshape)
    x = jnp.where(x > 0, x, a * x)
    if bias:
        x = x + out_bias.reshape(bshape)
    return x


if __name__ == "__main__":
    key = jax.random.PRNGKey(0)
    kx, kb1, kb2, kx2, kb3, kb4 = jax.random.split(key, 6)

    # --- Shape 1: H*W = 256 (< 512) -> lane-param layout (N, C*H*W) -------------
    N, C, H, W = 2, 4, 16, 16
    x = jax.random.normal(kx, (N, C, H, W), dtype=jnp.float32)
    prelu_weight = jnp.full((C,), 0.25, dtype=jnp.float32)   # nn.PReLU default init
    inp_bias = 0.1 * jax.random.normal(kb1, (C,), dtype=jnp.float32)
    out_bias = 0.1 * jax.random.normal(kb2, (C,), dtype=jnp.float32)

    y = jax.block_until_ready(rprelu_nchw(x, inp_bias, prelu_weight, out_bias, bias=True))
    y_ref = _reference(x, inp_bias, prelu_weight, out_bias, bias=True)
    assert y.shape == x.shape and y.dtype == x.dtype
    assert jnp.allclose(y, y_ref, atol=1e-6, rtol=1e-6), "mismatch (bias=True, lane layout)"

    # bias=False path (pure per-channel PReLU).
    y0 = jax.block_until_ready(
        rprelu_nchw(x, inp_bias, prelu_weight, out_bias, bias=False))
    y0_ref = _reference(x, inp_bias, prelu_weight, out_bias, bias=False)
    assert jnp.allclose(y0, y0_ref, atol=1e-6, rtol=1e-6), "mismatch (bias=False)"

    # --- Shape 2: H*W = 1024 (>=512, multiple of 128) -> row-param layout -------
    N2, C2, H2, W2 = 2, 8, 32, 32
    x2 = jax.random.normal(kx2, (N2, C2, H2, W2), dtype=jnp.float32)
    w2 = jnp.linspace(0.05, 0.4, C2).astype(jnp.float32)
    b2i = 0.1 * jax.random.normal(kb3, (C2,), dtype=jnp.float32)
    b2o = 0.1 * jax.random.normal(kb4, (C2,), dtype=jnp.float32)

    y2 = jax.block_until_ready(rprelu_nchw(x2, b2i, w2, b2o, bias=True))
    y2_ref = _reference(x2, b2i, w2, b2o, bias=True)
    assert y2.shape == x2.shape and y2.dtype == x2.dtype
    assert jnp.allclose(y2, y2_ref, atol=1e-6, rtol=1e-6), "mismatch (bias=True, row layout)"

    print("KERNEL_OK")
</pallas_src>

<mosaic_0001>
module attributes {stable_mosaic.version = 11 : i64} {
  func.func @_rprelu_laneparam_kernel(%arg0: i32, %arg1: i32, %arg2: memref<2x1024xf32, #tpu.memory_space<vmem>>, %arg3: memref<3x1024xf32, #tpu.memory_space<vmem>>, %arg4: memref<2x1024xf32, #tpu.memory_space<vmem>>) attributes {dimension_semantics = [#tpu.dimension_semantics<parallel>, #tpu.dimension_semantics<parallel>], iteration_bounds = array<i64: 1, 1>, scalar_prefetch = 0 : i64, scratch_operands = 0 : i64, tpu.core_type = #tpu.core_type<tc>, window_params = [{transform_indices = @transform_0, window_bounds = array<i64: 2, 1024>}, {transform_indices = @transform_1, window_bounds = array<i64: 3, 1024>}, {transform_indices = @transform_2, window_bounds = array<i64: 2, 1024>}]} {
    %c0 = arith.constant 0 : index
    %c0_0 = arith.constant 0 : index
    %0 = vector.load %arg2[%c0, %c0_0] : memref<2x1024xf32, #tpu.memory_space<vmem>>, vector<2x1024xf32>
    %c0_1 = arith.constant 0 : index
    %c0_2 = arith.constant 0 : index
    %1 = vector.load %arg3[%c0_1, %c0_2] : memref<3x1024xf32, #tpu.memory_space<vmem>>, vector<1x1024xf32>
    %c1 = arith.constant 1 : index
    %c0_3 = arith.constant 0 : index
    %2 = vector.load %arg3[%c1, %c0_3] : memref<3x1024xf32, #tpu.memory_space<vmem>>, vector<1x1024xf32>
    %c2 = arith.constant 2 : index
    %c0_4 = arith.constant 0 : index
    %3 = vector.load %arg3[%c2, %c0_4] : memref<3x1024xf32, #tpu.memory_space<vmem>>, vector<1x1024xf32>
    %4 = vector.broadcast %1 : vector<1x1024xf32> to vector<2x1024xf32>
    %5 = arith.addf %0, %4 : vector<2x1024xf32>
    %cst = arith.constant 0.000000e+00 : f32
    %6 = vector.broadcast %cst : f32 to vector<2x1024xf32>
    %7 = arith.cmpf ogt, %5, %6 : vector<2x1024xf32>
    %8 = vector.broadcast %2 : vector<1x1024xf32> to vector<2x1024xf32>
    %9 = arith.mulf %8, %5 : vector<2x1024xf32>
    %10 = arith.select %7, %5, %9 : vector<2x1024xi1>, vector<2x1024xf32>
    %11 = vector.broadcast %3 : vector<1x1024xf32> to vector<2x1024xf32>
    %12 = arith.addf %10, %11 : vector<2x1024xf32>
    %c0_5 = arith.constant 0 : index
    %c0_6 = arith.constant 0 : index
    %13 = vector.load %arg4[%c0_5, %c0_6] : memref<2x1024xf32, #tpu.memory_space<vmem>>, vector<2x1024xf32>
    tpu.vector_store %arg4[%c0_5, %c0_6], %12 {strides = array<i32>} : memref<2x1024xf32, #tpu.memory_space<vmem>>, vector<2x1024xf32>,
    return
  }
  func.func @transform_0(%arg0: i32, %arg1: i32) -> (i32, i32) {
    %c0_i32 = arith.constant 0 : i32
    return %arg0, %arg1 : i32, i32
  }
  func.func @transform_1(%arg0: i32, %arg1: i32) -> (i32, i32) {
    %c0_i32 = arith.constant 0 : i32
    %c0_i32_0 = arith.constant 0 : i32
    return %c0_i32, %arg1 : i32, i32
  }
  func.func @transform_2(%arg0: i32, %arg1: i32) -> (i32, i32) {
    %c0_i32 = arith.constant 0 : i32
    return %arg0, %arg1 : i32, i32
  }
}

</mosaic_0001>

<bundles_post_ra>
// kernel: rprelu_nchw.1
= control target key start
LH: loop header
LB: loop body
LE: loop exit
PB: predicated region body
PF: predicated region fallthrough
CT: control target
= control target key end

     0   :  { %v19_v0 = vlaneseq  ;;  %v310_v1 = vmov 1983009808   ;;  %s380_s1 = inlined_call_operand.vmem [shape: f32[3,1024], index: 1, kind: input, shape index: {}]   ;;  %s381_s0 = inlined_call_operand.vmem [shape: f32[2,1024], index: 0, kind: input, shape index: {}]   ;;  %s382_s2 = inlined_call_operand.vmem [shape: f32[2,1024], index: 2, kind: output, shape index: {}]  }
   0x1   :  { %v54_v2 = vunpack.c.l.s4 %v310_v1  ;;  %v13_v4 = vld [vmem:[%s380_s1] ss:$4 sm:$0xff]  ;;  %v308_v20 = vld [vmem:[%s380_s1 + $0x2] ss:$4 sm:$0xff]  ;;  %v307_v26 = vld [vmem:[%s380_s1 + $0x1] ss:$4 sm:$0xff] }
   0x2   :  { %v20_v3 = vshrl.u32 %v19_v0, 7  ;;  %v11_v25 = vld [vmem:[%s381_s0] sm:$0xff]  ;;  %v12_v51 = vld [vmem:[%s381_s0 + $0x8] sm:$0xff] }
   0x3   :  { %v55_v5 = vunpack.c.0.s8 %v54_v2 }
   0x4   :  { %v21_v6 = vsub.s32 0, %v20_v3  ;;  %v25_v7 = vsub.s32 1, %v20_v3  ;;  %v29_v8 = vsub.s32 2, %v20_v3  ;;  %v33_v9 = vsub.s32 3, %v20_v3 }
   0x5   :  { %v329_v10 = vsub.s32 %v55_v5, %v20_v3  ;;  %v331_v11 = vsub.s32 4, %v20_v3  ;;  %v333_v12 = vsub.s32 5, %v20_v3  ;;  %v335_v17 = vsub.s32 6, %v20_v3 }
   0x6   :  { %v22_v13 = vrot.slane %v13_v4, %v21_v6  ;;  %v26_v14 = vrot.slane %v13_v4, %v25_v7  ;;  %v30_v15 = vrot.slane %v13_v4, %v29_v8  ;;  %v34_v16 = vrot.slane %v13_v4, %v33_v9 }
   0x7   :  { %v38_v21 = vrot.slane %v13_v4, %v331_v11  ;;  %v42_v22 = vrot.slane %v13_v4, %v333_v12  ;;  %v46_v27 = vrot.slane %v13_v4, %v335_v17  ;;  %v49_v28 = vsub.s32 7, %v20_v3 }
   0x8   :  { %v51_v18 = vcombine.low %v22_v13, %v26_v14  ;;  %v52_v19 = vcombine.low %v30_v15, %v34_v16  ;;  %v234_v31 = vrot.slane %v308_v20, %v21_v6  ;;  %v238_v32 = vrot.slane %v308_v20, %v25_v7 }
   0x9   :  { %v68_v29 = vcombine.low %v38_v21, %v42_v22  ;;  %v242_v33 = vrot.slane %v308_v20, %v29_v8  ;;  %v246_v34 = vrot.slane %v308_v20, %v33_v9  ;;  %v50_v35 = vrot.slane %v13_v4, %v49_v28 }
   0xa   :  { %v59_v23 = vrot.slane %v51_v18, %v329_v10  ;;  %v66_v24 = vrot.slane %v52_v19, %v329_v10  ;;  %v95_v37 = vrot.slane %v307_v26, %v21_v6  ;;  %v99_v38 = vrot.slane %v307_v26, %v25_v7 }
   0xb   :  { %v69_v39 = vcombine.low %v46_v27, %v50_v35  ;;  %v76_v40 = vrot.slane %v68_v29, %v329_v10  ;;  %v103_v41 = vrot.slane %v307_v26, %v29_v8  ;;  %v263_v44 = vcombine.low %v234_v31, %v238_v32 }
   0xc   :  { %v67_v30 = vcombine.low %v59_v23, %v66_v24  ;;  %v264_v45 = vcombine.low %v242_v33, %v246_v34  ;;  %v107_v47 = vrot.slane %v307_v26, %v33_v9  ;;  %v111_v53 = vrot.slane %v307_v26, %v331_v11 }
   0xd   :  { %v83_v46 = vrot.slane %v69_v39, %v329_v10  ;;  %v271_v57 = vrot.slane %v263_v44, %v329_v10  ;;  %v250_v60 = vrot.slane %v308_v20, %v331_v11  ;;  %v254_v61 = vrot.slane %v308_v20, %v333_v12 }
   0xe   :  { %v87_v36 = vadd.f32 %v67_v30, %v11_v25  ;;  %v278_v58 = vrot.slane %v264_v45, %v329_v10  ;;  %v258_v0 = vrot.slane %v308_v20, %v335_v17  ;;  %v262_v1 = vrot.slane %v308_v20, %v49_v28 }
   0xf   :  { %v84_v52 = vcombine.low %v76_v40, %v83_v46  ;;  %v115_v2 = vrot.slane %v307_v26, %v333_v12  ;;  %v119_v3 = vrot.slane %v307_v26, %v335_v17  ;;  %v123_v8 = vrot.slane %v307_v26, %v49_v28 }
  0x10   :  { %v134_v42 = vcombine.high %v87_v36, %v87_v36  ;;  %v141_v43 = vrot.slane %v87_v36, %v329_v10  ;;  %v279_v15 = vcombine.low %v271_v57, %v278_v58  ;;  %v280_v16 = vcombine.low %v250_v60, %v254_v61 }
  0x11   :  { %v88_v59 = vadd.f32 %v84_v52, %v12_v51  ;;  %v281_v18 = vcombine.low %v258_v0, %v262_v1  ;;  %vm89_vm0 = vcmp.gt.f32.partialorder %v87_v36, 0.0 }
  0x12   :  { %v148_v48 = vrot.slane %v134_v42, %v329_v10  ;;  %v149_v49 = vcombine.high %v141_v43, %v141_v43  ;;  %v176_v50 = vmul.f32 %v141_v43, %v95_v37  ;;  %v288_v24 = vrot.slane %v280_v16, %v329_v10 }
  0x13   :  { %v151_v4 = vcombine.high %v88_v59, %v88_v59  ;;  %v158_v5 = vrot.slane %v88_v59, %v329_v10  ;;  %v295_v25 = vrot.slane %v281_v18, %v329_v10  ;;  %vm90_vm1 = vcmp.gt.f32.partialorder %v88_v59, 0.0 }
  0x14   :  { %v150_v54 = vcombine.high %v148_v48, %v148_v48  ;;  %v177_v55 = vmul.f32 %v149_v49, %v99_v38  ;;  %v178_v56 = vmul.f32 %v148_v48, %v103_v41 }
  0x15   :  { %v165_v9 = vrot.slane %v151_v4, %v329_v10  ;;  %v166_v11 = vcombine.high %v158_v5, %v158_v5  ;;  %v180_v13 = vmul.f32 %v158_v5, %v111_v53  ;;  %v296_v30 = vcombine.low %v288_v24, %v295_v25 }
  0x16   :  { %v179_v62 = vmul.f32 %v150_v54, %v107_v47  ;;  %v192_v63 = vcombine.low %v176_v50, %v177_v55 }
  0x17   :  { %v167_v12 = vcombine.high %v165_v9, %v165_v9  ;;  %v181_v19 = vmul.f32 %v166_v11, %v115_v2  ;;  %v182_v17 = vmul.f32 %v165_v9, %v119_v3 }
  0x18   :  { %v193_v6 = vcombine.low %v178_v56, %v179_v62  ;;  %v200_v7 = vrot.slane %v192_v63, %v329_v10 }
  0x19   :  { %v183_v21 = vmul.f32 %v167_v12, %v123_v8  ;;  %v209_v22 = vcombine.low %v180_v13, %v181_v19 }
  0x1a   :  { %v207_v14 = vrot.slane %v193_v6, %v329_v10 }
  0x1b   :  { %v210_v27 = vcombine.low %v182_v17, %v183_v21  ;;  %v217_v28 = vrot.slane %v209_v22, %v329_v10 }
  0x1c   :  { %v208_v20 = vcombine.low %v200_v7, %v207_v14 }
  0x1d   :  { %v224_v29 = vrot.slane %v210_v27, %v329_v10 }
  0x1e   :  { %v228_v23 = vsel %vm89_vm0, %v87_v36, %v208_v20 }
  0x1f   :  { %v299_v26 = vadd.f32 %v279_v15, %v228_v23  ;;  %v225_v31 = vcombine.low %v217_v28, %v224_v29 }
  0x21   :  { %301 = vst [vmem:[%s382_s2] sm:$0xff] %v299_v26  ;;  %v229_v32 = vsel %vm90_vm1, %v88_v59, %v225_v31 }
  0x22   :  { %v300_v33 = vadd.f32 %v296_v30, %v229_v32 }
  0x24   :  { %302 = vst [vmem:[%s382_s2 + $0x8] sm:$0xff] %v300_v33 }

</bundles_post_ra>
